<compile_context>
chip_gen: v7x
topology: tpu7x:2x2x1
jax: 0.10.0
libtpu: 0.0.40
codegen_flags: <defaults>
</compile_context>

<pallas_src>
import jax
import jax.numpy as jnp
from jax.experimental import pallas as pl
from jax.experimental.pallas import tpu as pltpu


def _round_up(x, m):
    return (x + m - 1) // m * m


def _cdiv(a, b):
    return (a + b - 1) // b


def _split_feature_dim(d, t_max):
    """Tile a feature dim with a tile <= max(128, t_max) minimizing padding.

    Returns (tile, padded_dim): tile % 128 == 0 and padded_dim % tile == 0.
    """
    d = _round_up(d, 128)
    t_max = max(128, _round_up(min(t_max, d), 128))
    chunks = _cdiv(d, t_max)
    tile = _round_up(_cdiv(d, chunks), 128)
    return tile, tile * chunks


def _pick_row_tile(m, tm_max):
    """Largest power-of-two row tile (>=8, <=tm_max) with <=12.5% padding waste."""
    m_rounded = _round_up(m, 8)
    best = 8
    t = 8
    while t <= tm_max:
        pad = _round_up(m_rounded, t) - m
        if pad * 8 <= max(m, 64):
            best = t
        t *= 2
    return best


def _vmem_bytes(tm, dp_in, tk, tn, nk, use_h_scratch, cbytes, obytes):
    """Rough VMEM footprint of one grid step (double-buffered blocks + scratch)."""
    b = 2 * tm * dp_in * cbytes            # x block
    b += 2 * dp_in * tk * cbytes           # w1 block
    b += 2 * 8 * tk * 4                    # b1 block (sublane padded)
    b += 2 * tk * tn * cbytes              # w2 block
    b += 2 * 8 * tn * 4                    # b2 block
    b += 2 * tm * 128 * 4                  # mask block (lane padded)
    b += 2 * tm * tn * obytes              # output block
    b += tm * tn * 4                       # f32 accumulator scratch
    if use_h_scratch:
        b += nk * tm * tk * cbytes         # cached ReLU activations
    return b


def _ffn_kernel(x_ref, w1_ref, b1_ref, w2_ref, b2_ref, mask_ref, o_ref,
                acc_ref, h_ref=None):
    # x_ref:  (tm, Dp_in)    w1_ref: (Dp_in, tk)    b1_ref: (1, tk)
    # w2_ref: (tk, tn)       b2_ref: (1, tn)        mask_ref: (tm, 1)
    # o_ref:  (tm, tn)       acc_ref: (tm, tn) f32
    # h_ref:  optional (nk, tm, tk) activation cache (present only when nn > 1)
    j = pl.program_id(1)
    k = pl.program_id(2)

    @pl.when(k == 0)
    def _():
        # Fold b2 into the accumulator init (saves an f32 pass in the epilogue).
        acc_ref[...] = jnp.broadcast_to(b2_ref[...], acc_ref.shape)

    if h_ref is None:
        # D_out not tiled (nn == 1): compute the ReLU activations directly.
        h = jnp.dot(x_ref[...], w1_ref[...], preferred_element_type=jnp.float32)
        h = jnp.maximum(h + b1_ref[...], 0.0).astype(w2_ref.dtype)
        acc_ref[...] += jnp.dot(h, w2_ref[...],
                                preferred_element_type=jnp.float32)
    else:
        # D_out tiled: compute h once per (row tile, k) at j == 0, cache it in
        # VMEM and re-use it for every other D_out tile (no first-GEMM redo).
        @pl.when(j == 0)
        def _():
            h = jnp.dot(x_ref[...], w1_ref[...],
                        preferred_element_type=jnp.float32)
            h_ref[k] = jnp.maximum(h + b1_ref[...], 0.0).astype(h_ref.dtype)

        acc_ref[...] += jnp.dot(h_ref[k], w2_ref[...],
                                preferred_element_type=jnp.float32)

    @pl.when(k == pl.num_programs(2) - 1)
    def _():
        o_ref[...] = (acc_ref[...] * mask_ref[...]).astype(o_ref.dtype)


def feed_forward(x, w1, b1, w2, b2, mask=None, *, tm=None, tk=None, tn=None,
                 compute_dtype=jnp.bfloat16):
    """x: [B, L, D_in], mask: optional [B, L].  Returns [B, L, D_out].

    w1: [H, D_in, 1], b1: [H], w2: [D_out, H, 1], b2: [D_out]  (Conv1d weights).
    """
    B, L, D_in = x.shape
    H = w1.shape[0]
    D_out = w2.shape[0]
    M = B * L

    cbytes = jnp.dtype(compute_dtype).itemsize
    obytes = jnp.dtype(x.dtype).itemsize

    Dp_in = _round_up(D_in, 128)
    Hp0 = _round_up(H, 128)
    Dp_out0 = _round_up(D_out, 128)

    # ---- per-generation VMEM budget (v5e/v6e: 128 MiB physical, v7x: 64 MiB) --
    try:
        phys_vmem = int(getattr(pltpu.get_tpu_info(), "vmem_capacity_bytes",
                                64 * 1024 * 1024))
    except Exception:
        phys_vmem = 64 * 1024 * 1024
    vmem_limit = min(96 * 1024 * 1024, (phys_vmem * 3) // 4)
    budget = (vmem_limit * 17) // 20          # ~15% headroom for the compiler

    # ---- row tile -----------------------------------------------------------
    tm_max = 1024 if phys_vmem > 96 * 1024 * 1024 else 512
    if tm is None:
        tm = _pick_row_tile(M, tm_max)
    tm = max(8, (min(tm, _round_up(M, 8)) // 8) * 8)

    # ---- feature tiles (nn == 1 strongly preferred: no recompute/scratch) ----
    def make_cfg(tk_max, tn_max):
        tk_c, hp_c = _split_feature_dim(Hp0, tk_max)
        tn_c, do_c = _split_feature_dim(Dp_out0, tn_max)
        return tk_c, hp_c, tn_c, do_c

    if tk is not None or tn is not None:
        cfgs = [make_cfg(tk if tk is not None else Hp0,
                         tn if tn is not None else Dp_out0)]
    else:
        cfgs = [make_cfg(t, Dp_out0)
                for t in (Hp0, 1024, 512, 256, 128) if t <= Hp0]
        cfgs += [make_cfg(min(512, Hp0), t)
                 for t in (1024, 512, 256, 128) if t < Dp_out0]

    def fits(tm_, cfg):
        tk_, hp_, tn_, do_ = cfg
        return _vmem_bytes(tm_, Dp_in, tk_, tn_, hp_ // tk_, (do_ // tn_) > 1,
                           cbytes, obytes) <= budget

    chosen = None
    while chosen is None:
        for cfg in cfgs:
            if fits(tm, cfg):
                chosen = cfg
                break
        if chosen is None:
            if tm <= 8:
                chosen = cfgs[-1]          # best effort; compiler may still fit
            else:
                tm = max(8, (tm // 16) * 8)
    tk, Hp, tn, Dp_out_p = chosen

    Mp = _round_up(M, tm)
    nm, nn, nk = Mp // tm, Dp_out_p // tn, Hp // tk

    # ---- megacore: ensure both TensorCores get parallel work (v7x) -----------
    if nm * nn == 1 and tm >= 16 and tm % 16 == 0:
        tm //= 2
        Mp = _round_up(M, tm)
        nm = Mp // tm

    use_h_scratch = nn > 1

    # ---- wrapper-side layout: rows = tokens, features last, zero padding -----
    x2 = jnp.pad(x.reshape(M, D_in),
                 ((0, Mp - M), (0, Dp_in - D_in))).astype(compute_dtype)
    w1_t = jnp.pad(w1.reshape(H, D_in).T,
                   ((0, Dp_in - D_in), (0, Hp - H))).astype(compute_dtype)
    b1_2 = jnp.pad(b1.reshape(1, H), ((0, 0), (0, Hp - H))).astype(jnp.float32)
    w2_t = jnp.pad(w2.reshape(D_out, H).T,
                   ((0, Hp - H), (0, Dp_out_p - D_out))).astype(compute_dtype)
    b2_2 = jnp.pad(b2.reshape(1, D_out),
                   ((0, 0), (0, Dp_out_p - D_out))).astype(jnp.float32)
    if mask is None:
        m2 = jnp.ones((Mp, 1), jnp.float32)
    else:
        m2 = jnp.pad(mask.reshape(M, 1).astype(jnp.float32),
                     ((0, Mp - M), (0, 0)))

    # w1/b1 are only read at j == 0; collapse their block index for j > 0 so
    # the large w1 block is not re-streamed from HBM for every D_out tile.
    def w1_index(i, j, k):
        return (0, jnp.where(j == 0, k, 0))

    in_specs = [
        pl.BlockSpec((tm, Dp_in), lambda i, j, k: (i, 0)),
        pl.BlockSpec((Dp_in, tk), w1_index),
        pl.BlockSpec((1, tk), w1_index),
        pl.BlockSpec((tk, tn), lambda i, j, k: (k, j)),
        pl.BlockSpec((1, tn), lambda i, j, k: (0, j)),
        pl.BlockSpec((tm, 1), lambda i, j, k: (i, 0)),
    ]
    out_spec = pl.BlockSpec((tm, tn), lambda i, j, k: (i, j))

    scratch_shapes = [pltpu.VMEM((tm, tn), jnp.float32)]
    if use_h_scratch:
        scratch_shapes.append(pltpu.VMEM((nk, tm, tk), compute_dtype))

    # Cost estimate reflecting actual streaming: w1 once per row tile plus one
    # extra (unused) block per additional D_out tile, w2 once per row tile.
    flops = 2 * Mp * Dp_in * Hp + 2 * Mp * Hp * Dp_out_p
    bytes_accessed = (
        Mp * Dp_in * cbytes
        + nm * (nk + (nn - 1)) * Dp_in * tk * cbytes
        + nm * Hp * Dp_out_p * cbytes
        + Mp * Dp_out_p * obytes
        + Hp * 4 + Dp_out_p * 4 + Mp * 4
    )
    cost = pl.CostEstimate(flops=flops, transcendentals=0,
                           bytes_accessed=bytes_accessed)

    dim_sem = ("parallel",
               "arbitrary" if use_h_scratch else "parallel",
               "arbitrary")

    out = pl.pallas_call(
        _ffn_kernel,
        out_shape=jax.ShapeDtypeStruct((Mp, Dp_out_p), x.dtype),
        grid_spec=pltpu.PrefetchScalarGridSpec(
            num_scalar_prefetch=0,
            grid=(nm, nn, nk),
            in_specs=in_specs,
            out_specs=out_spec,
            scratch_shapes=scratch_shapes,
        ),
        compiler_params=pltpu.CompilerParams(
            dimension_semantics=dim_sem,
            vmem_limit_bytes=int(vmem_limit),
        ),
        cost_estimate=cost,
    )(x2, w1_t, b1_2, w2_t, b2_2, m2)

    # TODO(synk): training-mode dropout (drop_rate > 0) is not implemented; the
    # module default drop_rate=0.0 makes dropout the identity in the forward.
    return out[:M, :D_out].reshape(B, L, D_out)


def init_params(key, in_dim, hid_dim, out_dim):
    """Deterministic PyTorch-style uniform init for Conv1d(kernel_size=1) layers."""
    k1, k2, k3, k4 = jax.random.split(key, 4)
    bound1 = 1.0 / jnp.sqrt(in_dim)
    bound2 = 1.0 / jnp.sqrt(hid_dim)
    w1 = jax.random.uniform(k1, (hid_dim, in_dim, 1), jnp.float32, -bound1, bound1)
    b1 = jax.random.uniform(k2, (hid_dim,), jnp.float32, -bound1, bound1)
    w2 = jax.random.uniform(k3, (out_dim, hid_dim, 1), jnp.float32, -bound2, bound2)
    b2 = jax.random.uniform(k4, (out_dim,), jnp.float32, -bound2, bound2)
    return w1, b1, w2, b2


def _reference(x, w1, b1, w2, b2, mask=None):
    # Pure-JAX f32 reference mimicking the PyTorch forward.
    h = jnp.einsum("bld,hd->blh", x, w1[..., 0]) + b1
    h = jnp.maximum(h, 0.0)
    o = jnp.einsum("blh,oh->blo", h, w2[..., 0]) + b2
    if mask is not None:
        o = o * mask[..., None].astype(o.dtype)
    return o


if __name__ == "__main__":
    key = jax.random.PRNGKey(0)

    # ---- case 1: small FFN, default (auto-tiled, nn == 1) path ---------------
    B, L, D_in, H, D_out = 2, 8, 32, 64, 32
    kx, km, kp, kp2 = jax.random.split(key, 4)
    x = jax.random.normal(kx, (B, L, D_in), jnp.float32)
    mask = (jax.random.uniform(km, (B, L)) > 0.3).astype(jnp.float32)
    w1, b1, w2, b2 = init_params(kp, D_in, H, D_out)
    ref = _reference(x, w1, b1, w2, b2, mask=mask)

    out_f32 = jax.block_until_ready(
        feed_forward(x, w1, b1, w2, b2, mask=mask, compute_dtype=jnp.float32))
    assert out_f32.shape == (B, L, D_out)
    assert jnp.allclose(out_f32, ref, atol=2e-5, rtol=2e-5), "f32 mismatch"

    out_bf16 = jax.block_until_ready(feed_forward(x, w1, b1, w2, b2, mask=mask))
    assert out_bf16.shape == (B, L, D_out)
    assert jnp.allclose(out_bf16, ref, atol=1e-1, rtol=1e-1), "bf16 mismatch"

    # ---- case 2: force D_out/H tiling to exercise the h-scratch (j>0) path ---
    D_in2, H2, D_out2 = 64, 256, 256
    x2 = jax.random.normal(kx, (B, L, D_in2), jnp.float32)
    w1b, b1b, w2b, b2b = init_params(kp2, D_in2, H2, D_out2)
    ref2 = _reference(x2, w1b, b1b, w2b, b2b, mask=mask)
    out2 = jax.block_until_ready(
        feed_forward(x2, w1b, b1b, w2b, b2b, mask=mask,
                     tk=128, tn=128, compute_dtype=jnp.float32))
    assert out2.shape == (B, L, D_out2)
    assert jnp.allclose(out2, ref2, atol=2e-5, rtol=2e-5), "tiled-D_out mismatch"

    print("KERNEL_OK")
</pallas_src>

<mosaic_0001>
module attributes {stable_mosaic.version = 11 : i64} {
  func.func @_ffn_kernel(%arg0: i32, %arg1: i32, %arg2: i32, %arg3: memref<8x128xf32, #tpu.memory_space<vmem>>, %arg4: memref<128x128xf32, #tpu.memory_space<vmem>>, %arg5: memref<1x128xf32, #tpu.memory_space<vmem>>, %arg6: memref<128x128xf32, #tpu.memory_space<vmem>>, %arg7: memref<1x128xf32, #tpu.memory_space<vmem>>, %arg8: memref<8x1xf32, #tpu.memory_space<vmem>>, %arg9: memref<8x128xf32, #tpu.memory_space<vmem>>, %arg10: memref<8x128xf32, #tpu.memory_space<vmem>>) attributes {dimension_semantics = [#tpu.dimension_semantics<parallel>, #tpu.dimension_semantics<parallel>, #tpu.dimension_semantics<arbitrary>], iteration_bounds = array<i64: 2, 1, 1>, scalar_prefetch = 0 : i64, scratch_operands = 1 : i64, tpu.core_type = #tpu.core_type<tc>, window_params = [{transform_indices = @transform_0, window_bounds = array<i64: 8, 128>}, {transform_indices = @transform_1, window_bounds = array<i64: 128, 128>}, {transform_indices = @transform_2, window_bounds = array<i64: 1, 128>}, {transform_indices = @transform_3, window_bounds = array<i64: 128, 128>}, {transform_indices = @transform_4, window_bounds = array<i64: 1, 128>}, {transform_indices = @transform_5, window_bounds = array<i64: 8, 1>}, {transform_indices = @transform_6, window_bounds = array<i64: 8, 128>}]} {
    %c0_i32 = arith.constant 0 : i32
    %0 = arith.cmpi eq, %arg2, %c0_i32 : i32
    %1 = arith.extui %0 : i1 to i32
    %c0_i32_0 = arith.constant 0 : i32
    %2 = arith.cmpi ne, %1, %c0_i32_0 : i32
    scf.if %2 {
      %c0_16 = arith.constant 0 : index
      %c0_17 = arith.constant 0 : index
      %19 = vector.load %arg7[%c0_16, %c0_17] : memref<1x128xf32, #tpu.memory_space<vmem>>, vector<1x128xf32>
      %20 = vector.shape_cast %19 : vector<1x128xf32> to vector<1x128xf32>
      %21 = vector.broadcast %20 : vector<1x128xf32> to vector<8x128xf32>
      %c0_18 = arith.constant 0 : index
      %c0_19 = arith.constant 0 : index
      %22 = vector.load %arg10[%c0_18, %c0_19] : memref<8x128xf32, #tpu.memory_space<vmem>>, vector<8x128xf32>
      tpu.vector_store %arg10[%c0_18, %c0_19], %21 {strides = array<i32>} : memref<8x128xf32, #tpu.memory_space<vmem>>, vector<8x128xf32>,
    } else {
    }
    %c0 = arith.constant 0 : index
    %c0_1 = arith.constant 0 : index
    %3 = vector.load %arg3[%c0, %c0_1] : memref<8x128xf32, #tpu.memory_space<vmem>>, vector<8x128xf32>
    %c0_2 = arith.constant 0 : index
    %c0_3 = arith.constant 0 : index
    %4 = vector.load %arg4[%c0_2, %c0_3] : memref<128x128xf32, #tpu.memory_space<vmem>>, vector<128x128xf32>
    %cst = arith.constant dense<0.000000e+00> : vector<8x128xf32>
    %5 = tpu.matmul %3, %4, %cst {dimension_numbers = #tpu.dot_dimension_numbers<[1], [0], [0], [1], [0, 0, 1, 1], [], []>} : vector<8x128xf32>, vector<128x128xf32>, vector<8x128xf32> -> vector<8x128xf32>
    %c0_4 = arith.constant 0 : index
    %c0_5 = arith.constant 0 : index
    %6 = vector.load %arg5[%c0_4, %c0_5] : memref<1x128xf32, #tpu.memory_space<vmem>>, vector<1x128xf32>
    %7 = vector.broadcast %6 : vector<1x128xf32> to vector<8x128xf32>
    %8 = arith.addf %5, %7 : vector<8x128xf32>
    %cst_6 = arith.constant 0.000000e+00 : f32
    %9 = vector.broadcast %cst_6 : f32 to vector<8x128xf32>
    %10 = arith.maximumf %8, %9 : vector<8x128xf32>
    %c0_7 = arith.constant 0 : index
    %c0_8 = arith.constant 0 : index
    %11 = vector.load %arg10[%c0_7, %c0_8] : memref<8x128xf32, #tpu.memory_space<vmem>>, vector<8x128xf32>
    %c0_9 = arith.constant 0 : index
    %c0_10 = arith.constant 0 : index
    %12 = vector.load %arg6[%c0_9, %c0_10] : memref<128x128xf32, #tpu.memory_space<vmem>>, vector<128x128xf32>
    %cst_11 = arith.constant dense<0.000000e+00> : vector<8x128xf32>
    %13 = tpu.matmul %10, %12, %cst_11 {dimension_numbers = #tpu.dot_dimension_numbers<[1], [0], [0], [1], [0, 0, 1, 1], [], []>} : vector<8x128xf32>, vector<128x128xf32>, vector<8x128xf32> -> vector<8x128xf32>
    %14 = arith.addf %11, %13 : vector<8x128xf32>
    %c0_12 = arith.constant 0 : index
    %c0_13 = arith.constant 0 : index
    %15 = vector.load %arg10[%c0_12, %c0_13] : memref<8x128xf32, #tpu.memory_space<vmem>>, vector<8x128xf32>
    tpu.vector_store %arg10[%c0_12, %c0_13], %14 {strides = array<i32>} : memref<8x128xf32, #tpu.memory_space<vmem>>, vector<8x128xf32>,
    %c0_i32_14 = arith.constant 0 : i32
    %16 = arith.cmpi eq, %arg2, %c0_i32_14 : i32
    %17 = arith.extui %16 : i1 to i32
    %c0_i32_15 = arith.constant 0 : i32
    %18 = arith.cmpi ne, %17, %c0_i32_15 : i32
    scf.if %18 {
      %c0_16 = arith.constant 0 : index
      %c0_17 = arith.constant 0 : index
      %19 = vector.load %arg10[%c0_16, %c0_17] : memref<8x128xf32, #tpu.memory_space<vmem>>, vector<8x128xf32>
      %c0_18 = arith.constant 0 : index
      %c0_19 = arith.constant 0 : index
      %20 = vector.load %arg8[%c0_18, %c0_19] : memref<8x1xf32, #tpu.memory_space<vmem>>, vector<8x1xf32>
      %21 = vector.broadcast %20 : vector<8x1xf32> to vector<8x128xf32>
      %22 = arith.mulf %19, %21 : vector<8x128xf32>
      %c0_20 = arith.constant 0 : index
      %c0_21 = arith.constant 0 : index
      %23 = vector.load %arg9[%c0_20, %c0_21] : memref<8x128xf32, #tpu.memory_space<vmem>>, vector<8x128xf32>
      tpu.vector_store %arg9[%c0_20, %c0_21], %22 {strides = array<i32>} : memref<8x128xf32, #tpu.memory_space<vmem>>, vector<8x128xf32>,
    } else {
    }
    return
  }
  func.func @transform_0(%arg0: i32, %arg1: i32, %arg2: i32) -> (i32, i32) {
    %c0_i32 = arith.constant 0 : i32
    %c0_i32_0 = arith.constant 0 : i32
    return %arg0, %c0_i32 : i32, i32
  }
  func.func @transform_1(%arg0: i32, %arg1: i32, %arg2: i32) -> (i32, i32) {
    %c0_i32 = arith.constant 0 : i32
    %0 = arith.cmpi eq, %arg1, %c0_i32 : i32
    %c0_i32_0 = arith.constant 0 : i32
    %1 = arith.select %0, %arg2, %c0_i32_0 : i32
    %c0_i32_1 = arith.constant 0 : i32
    %c0_i32_2 = arith.constant 0 : i32
    return %c0_i32_1, %1 : i32, i32
  }
  func.func @transform_2(%arg0: i32, %arg1: i32, %arg2: i32) -> (i32, i32) {
    %c0_i32 = arith.constant 0 : i32
    %0 = arith.cmpi eq, %arg1, %c0_i32 : i32
    %c0_i32_0 = arith.constant 0 : i32
    %1 = arith.select %0, %arg2, %c0_i32_0 : i32
    %c0_i32_1 = arith.constant 0 : i32
    %c0_i32_2 = arith.constant 0 : i32
    return %c0_i32_1, %1 : i32, i32
  }
  func.func @transform_3(%arg0: i32, %arg1: i32, %arg2: i32) -> (i32, i32) {
    %c0_i32 = arith.constant 0 : i32
    return %arg2, %arg1 : i32, i32
  }
  func.func @transform_4(%arg0: i32, %arg1: i32, %arg2: i32) -> (i32, i32) {
    %c0_i32 = arith.constant 0 : i32
    %c0_i32_0 = arith.constant 0 : i32
    return %c0_i32, %arg1 : i32, i32
  }
  func.func @transform_5(%arg0: i32, %arg1: i32, %arg2: i32) -> (i32, i32) {
    %c0_i32 = arith.constant 0 : i32
    %c0_i32_0 = arith.constant 0 : i32
    return %arg0, %c0_i32 : i32, i32
  }
  func.func @transform_6(%arg0: i32, %arg1: i32, %arg2: i32) -> (i32, i32) {
    %c0_i32 = arith.constant 0 : i32
    return %arg0, %arg1 : i32, i32
  }
}

</mosaic_0001>

<bundles_post_ra>
// kernel: tpu_custom_call.1
= control target key start
LH: loop header
LB: loop body
LE: loop exit
PB: predicated region body
PF: predicated region fallthrough
CT: control target
= control target key end

     0   :  { %11 = vsyncpa [#allocation4], 0  ;;  %s1400_s0 = inlined_call_operand.vmem [shape: f32[16,128], index: 0, kind: input, shape index: {}]   ;;  %s1401_s1 = inlined_call_operand.hbm [shape: f32[128,128], index: 1, kind: input, shape index: {}]   ;;  %s1402_s2 = inlined_call_operand.vmem [shape: f32[1,128], index: 2, kind: input, shape index: {}]   ;;  %s1403_s3 = inlined_call_operand.hbm [shape: f32[128,128], index: 3, kind: input, shape index: {}]   ;;  %s1404_s4 = inlined_call_operand.vmem [shape: f32[1,128], index: 4, kind: input, shape index: {}]   ;;  %s1405_s5 = inlined_call_operand.vmem [shape: f32[16,1], index: 5, kind: input, shape index: {}]   ;;  %s1406_s6 = inlined_call_operand.hbm [shape: f32[16,128], index: 6, kind: output, shape index: {}]  }
   0x1   :  { %12 = vsyncpa [#allocation7], 0 }
   0x2   :  { %13 = vsyncpa [#allocation5], 0 }
   0x3   :  { %15 = vsyncpa [#allocation5 + $0x1], 0  ;;  %s1185_s21 = smov 0   ;;  %s1187_s22 = smov 0  }
   0x4   :  { %s1189_s23 = smov 0   ;;  %s1191_s24 = smov 0  }
   0x5   :  { %s1193_s25 = smov 0   ;;  %s1195_s26 = smov 0  }
   0x6 LB: > { %1413 = sst [smem:[#allocation12_spill]] %s1135_s25  ;;  %s742_s27 = sadd.s32 4294967295, %s1139_s26   ;;  %s1139_s26 = sphi %s1195_s26, %s21_s26   ;;  %s1135_s25 = sphi %s1193_s25, %s1425_s25   ;;  %s1131_s24 = sphi %s1191_s24, %s1424_s24   ;;  %s1127_s23 = sphi %s1189_s23, %s1428_s23   ;;  %s1123_s22 = sphi %s1187_s22, %s1427_s22   ;;  %s1119_s21 = sphi %s1185_s21, %s1426_s21  }
   0x7   : > { %s743_s28 = sadd.s32 4294967294, %s1139_s26   ;;  %s40_s29 = sadd.s32 1, %s1135_s25 }
   0x8   : > { %s215_s30 = sadd.s32 1, %s1127_s23  ;;  %p42_p0 = scmp.ge.s32.totalorder %s40_s29, 2 }
   0x9   : > { %p225_p1 = scmp.ne.s32.totalorder %s1127_s23, %s1123_s22  ;;  %p226_p2 = scmp.eq.s32.totalorder %s742_s27, 1 }
   0xa   : > { %p231_p3 = scmp.ne.s32.totalorder %s1123_s22, %s1119_s21  ;;  %s1430_s29 = smov (%p42_p0, %s40_s29), 0 }
   0xb   : > { %1414 = sst [smem:[#allocation13_spill]] %s1430_s29  ;;  %p1225_p4 = por %p226_p2, %p225_p1 }
   0xc   : > { %p232_p5 = scmp.eq.s32.totalorder %s743_s28, 1  ;;  %s210_s8 = ssub.s32 %s1135_s25, %s1430_s29 }
   0xd   : > { %s1415_s7 = scalar_select %p1225_p4, 1, 0 }
   0xe   : > { %p744_p6 = scmp.ge.s32.totalorder %s1139_s26, 1  ;;  %p213_p7 = scmp.eq.s32.totalorder %s210_s8, 0 }
   0xf   : > { %p1232_p8 = por %p232_p5, %p231_p3  ;;  %p239_p9 = scmp.lt.s32.totalorder %s1139_s26, 3 }
  0x10   : > { %s1238_s10 = scalar_select %p213_p7, %s1127_s23, %s215_s30  }
  0x11   : > { %s1416_s9 = scalar_select %p1232_p8, 1, 0 }
  0x12   : > { %p1240_p10 = pnand %p744_p6, %p239_p9  ;;  %p1244_p11 = scmp.eq.s32.totalorder %s742_s27, 0 }
  0x13   : > { %s1141_s13 = smov [#allocation3]   ;;  %s1142_s16 = smov [#allocation6]  }
  0x14   : > { %s1417_s11 = scalar_select %p1240_p10, 1, 0 }
  0x15   : > { %s1418_s12 = scalar_select %p1244_p11, 1, 0 }
  0x16   : > { %p924_p12 = pneg %p1240_p10  ;;  %s255_s14 = sshll.u32 %s1141_s13, 4  ;;  %s256_s14 = int_to_ptr.vmem [resolvable:$true] %s255_s14 }
  0x17   : > { %s282_s17 = sshll.u32 %s1142_s16, 4  ;;  %s997_s20 = scalar_lea.hbm %s1401_s1, 2048  ;;  %s1256_s17 = int_to_ptr.vmem [resolvable:$true] %s282_s17 }
  0x18   : > { %p1252_p13 = pnand %p1244_p11, %p924_p12  ;;  %p998_p0 = scmp.ne.s32.totalorder %s1401_s1, %s997_s20 }
  0x19   : > { %p1004_p5 = scmp.lt.u32.totalorder %s997_s20, %s1401_s1 }
  0x1a   : > { %p999_p1 = pneg %p1252_p13 }
  0x1c   : > { %p1000_p2 = pnand %p999_p1, %p998_p0 }
  0x1e   : > { %p1001_p3 = pneg %p1000_p2 }
  0x20   : > { %p1006_p6 = pnand %p1004_p5, %p1001_p3 }
  0x22   : > { %1009 = shalt.err (!%p1006_p6)
}
  0x23   : > { %s1010_s13 = scalar_lea.vmem %s256_s14, 2048  ;;  %p1018_p8 = scmp.lt.s32.totalorder %s256_s14, %s256_s14 }
  0x24   : > { %p1011_p7 = scmp.ne.s32.totalorder %s256_s14, %s1010_s13  ;;  %p1019_p4 = scmp.lt.s32.totalorder %s1010_s13, %s1010_s13 }
  0x26   : > { %p1013_p9 = pnand %p1011_p7, %p999_p1  ;;  %p1020_p11 = por %p1019_p4, %p1018_p8 }
  0x28   : > { %p1014_p12 = pneg %p1013_p9 }
  0x2a   : > { %p1021_p10 = pnand %p1020_p11, %p1014_p12 }
  0x2c   : > { %1024 = shalt.err (!%p1021_p10)
}
  0x2d   : > { %s1143_s16 = smov 128   ;;  %s1144_s18 = smov 8  }
  0x2e   : > { %927 = dma.hbm_to_vmem [thread:$0]  (!%p1252_p13), %s1401_s1, 2048, %s256_s14, [#allocation4], %s1143_s16, %s1143_s16, %s1144_s18  }
  0x2f   : > { %s1025_s30 = scalar_lea.hbm %s1403_s3, 2048 }
  0x30   : > { %p1026_p0 = scmp.ne.s32.totalorder %s1403_s3, %s1025_s30  ;;  %p1032_p10 = scmp.lt.u32.totalorder %s1025_s30, %s1403_s3 }
  0x32   : > { %p1028_p4 = pnand %p1026_p0, %p999_p1 }
  0x34   : > { %p1029_p8 = pneg %p1028_p4 }
  0x36   : > { %p1034_p11 = pnand %p1032_p10, %p1029_p8 }
  0x38   : > { %1037 = shalt.err (!%p1034_p11)
}
  0x39   : > { %s1038_s14 = scalar_lea.vmem %s1256_s17, 2048  ;;  %p1046_p6 = scmp.lt.s32.totalorder %s1256_s17, %s1256_s17 }
  0x3a   : > { %p1039_p2 = scmp.ne.s32.totalorder %s1256_s17, %s1038_s14  ;;  %p1047_p7 = scmp.lt.s32.totalorder %s1038_s14, %s1038_s14 }
  0x3c   : > { %p1041_p3 = pnand %p1039_p2, %p999_p1  ;;  %p1048_p9 = por %p1047_p7, %p1046_p6 }
  0x3e   : > { %p1042_p5 = pneg %p1041_p3 }
  0x40   : > { %p1049_p12 = pnand %p1048_p9, %p1042_p5 }
  0x42   : > { %1052 = shalt.err (!%p1049_p12)
}
  0x43   : > { %930 = dma.hbm_to_vmem [thread:$0]  (!%p1252_p13), %s1403_s3, 2048, %s1256_s17, [#allocation7], %s1143_s16, %s1143_s16, %s1144_s18  }
  0x44   : > { %p1420_p0 = scmp.ne.s32.totalorder %s1417_s11, 0 }
  0x45   : > { %p1421_p4 = scmp.ne.s32.totalorder (!%p1420_p0), %s1418_s12, 0 }
  0x46   : > { %318 = sbr.rel (%p1420_p0) target bundleno = 561 (0x231), region = 44 }
  0x4d   : > { %1106 = dma.done.wait (%p1421_p4), [#allocation4], 2048  }
  0x4e   : > { %1108 = vsyncadd (%p1421_p4), [#allocation4], 4294965248 }
  0x4f   : > { %1110 = dma.done.wait (%p1421_p4), [#allocation7], 2048  }
  0x50   : > { %1112 = vsyncadd (%p1421_p4), [#allocation7], 4294965248  ;;  %v1145_v0 = vmov 0.0|0.0   ;;  %vm1146_vm0 = vmmov 0   ;;  %v1147_v1 = vmov 0.0   ;;  %v397_v2 = vld [vmem:[#allocation3] sm:$0xff] }
  0x51   : > { %866 = vmatprep.subr.bf16.mxu0 %v1145_v0  ;;  %828 = vmatprep.mubr.msk.f32.mxu0 %vm1146_vm0, %v1147_v1  ;;  %v398_v3 = vld [vmem:[#allocation3 + $0x8] sm:$0xff]  ;;  %v399_v4 = vld [vmem:[#allocation3 + $0x10] sm:$0xff]  ;;  %v400_v6 = vld [vmem:[#allocation3 + $0x18] sm:$0xff]  ;;  %p363_p13 = scmp.lt.s32.totalorder %s1131_s24, 1  ;;  %v1148_v51 = vmov 0   ;;  %s360_s30 = sand.u32 1, %s1123_s22  }
  0x52   : > { %890 = vmatprep.subr.bf16.mxu1 %v1145_v0  ;;  %863 = vmatprep.mubr.msk.f32.mxu1 %vm1146_vm0, %v1147_v1  ;;  %v867_v5 = vpack.c.bf16 %v398_v3, %v397_v2  ;;  %v870_v7 = vpack.c.bf16 %v400_v6, %v399_v4  ;;  %v401_v8 = vld [vmem:[#allocation3 + $0x20] sm:$0xff]  ;;  %v402_v9 = vld [vmem:[#allocation3 + $0x28] sm:$0xff]  ;;  %v494_v12 = vld [vmem:[#allocation6 + $0x10] sm:$0xff]  ;;  %s753_s8 = sshll.u32 %s360_s30, 3  ;;  %s759_s25 = sshll.u32 %s1131_s24, 7 }
  0x53   : > { %v492_v10 = vld [vmem:[#allocation6] sm:$0xff]  ;;  %v493_v11 = vld [vmem:[#allocation6 + $0x8] sm:$0xff]  ;;  %v495_v13 = vld [vmem:[#allocation6 + $0x18] sm:$0xff]  ;;  %v873_v14 = vpack.c.bf16 %v402_v9, %v401_v8  ;;  %s1327_s11 = scalar_select %p363_p13, %s1131_s24, 1  ;;  %996 = vset.pattern.permute.xlu0 %v1148_v51 }
  0x54   : > { %868 = vmatpush3.bf16.msra.mxu0 %v867_v5  ;;  %v891_v15 = vpack.c.bf16 %v493_v11, %v492_v10  ;;  %v403_v16 = vld [vmem:[#allocation3 + $0x30] sm:$0xff]  ;;  %v404_v17 = vld [vmem:[#allocation3 + $0x38] sm:$0xff]  ;;  %v894_v18 = vpack.c.bf16 %v495_v13, %v494_v12  ;;  %v496_v19 = vld [vmem:[#allocation6 + $0x20] sm:$0xff]  ;;  %s362_s29 = scalar_lea.vmem [#allocation8], %s753_s8  ;;  %s1353_s17 = scalar_lea.hbm %s1406_s6, %s759_s25 }
  0x55   : > { %869 = vmatprep.subr.bf16.mxu0 %v1145_v0  ;;  %v497_v20 = vld [vmem:[#allocation6 + $0x28] sm:$0xff]  ;;  %v876_v21 = vpack.c.bf16 %v404_v17, %v403_v16  ;;  %v405_v22 = vld [vmem:[#allocation3 + $0x40] sm:$0xff]  ;;  %v498_v25 = vld [vmem:[#allocation6 + $0x30] sm:$0xff]  ;;  %s754_s12 = sshll.u32 %s1327_s11, 3  ;;  %s607_s11 = sshll.u32 %s362_s29, 4  ;;  %s1355_s11 = int_to_ptr.vmem [resolvable:$true] %s607_s11 }
  0x56   : > { %892 = vmatpush3.bf16.msra.mxu1 %v891_v15  ;;  %v406_v23 = vld [vmem:[#allocation3 + $0x48] sm:$0xff]  ;;  %v897_v24 = vpack.c.bf16 %v497_v20, %v496_v19  ;;  %v499_v26 = vld [vmem:[#allocation6 + $0x38] sm:$0xff]  ;;  %v407_v28 = vld [vmem:[#allocation3 + $0x50] sm:$0xff]  ;;  %s366_s16 = scalar_lea.vmem %s1400_s0, %s754_s12  ;;  %s383_s20 = scalar_lea.vmem %s1405_s5, %s754_s12 }
  0x57   : > { %893 = vmatprep.subr.bf16.mxu1 %v1145_v0  ;;  %v879_v27 = vpack.c.bf16 %v406_v23, %v405_v22  ;;  %v408_v29 = vld [vmem:[#allocation3 + $0x58] sm:$0xff]  ;;  %v900_v30 = vpack.c.bf16 %v499_v26, %v498_v25  ;;  %v500_v31 = vld [vmem:[#allocation6 + $0x40] sm:$0xff]  ;;  %v501_v32 = vld [vmem:[#allocation6 + $0x48] sm:$0xff]  ;;  %s1053_s18 = scalar_lea.vmem %s1355_s11, 128  ;;  %p1422_p8 = scmp.ne.s32.totalorder %s1415_s7, 0 }
  0x58   : > { %871 = vmatpush3.bf16.msra.mxu0 %v870_v7  ;;  %v882_v33 = vpack.c.bf16 %v408_v29, %v407_v28  ;;  %v409_v34 = vld [vmem:[#allocation3 + $0x60] sm:$0xff]  ;;  %v410_v35 = vld [vmem:[#allocation3 + $0x68] sm:$0xff]  ;;  %v903_v36 = vpack.c.bf16 %v501_v32, %v500_v31  ;;  %v502_v37 = vld [vmem:[#allocation6 + $0x50] sm:$0xff]  ;;  %p1054_p1 = scmp.ne.s32.totalorder %s1355_s11, %s1053_s18  ;;  %s1149_s24 = smov [#allocation8]  }
  0x59   : > { %872 = vmatprep.subr.bf16.mxu0 %v1145_v0  ;;  %v503_v38 = vld [vmem:[#allocation6 + $0x58] sm:$0xff]  ;;  %v885_v39 = vpack.c.bf16 %v410_v35, %v409_v34  ;;  %v411_v40 = vld [vmem:[#allocation3 + $0x70] sm:$0xff]  ;;  %v504_v43 = vld [vmem:[#allocation6 + $0x60] sm:$0xff]  ;;  %s1057_s19 = sshll.u32 %s1149_s24, 4  ;;  %s1058_s19 = int_to_ptr.vmem [resolvable:$false] %s1057_s19 }
  0x5a   : > { %895 = vmatpush3.bf16.msra.mxu1 %v894_v18  ;;  %v412_v41 = vld [vmem:[#allocation3 + $0x78] sm:$0xff]  ;;  %v906_v42 = vpack.c.bf16 %v503_v38, %v502_v37  ;;  %v505_v44 = vld [vmem:[#allocation6 + $0x68] sm:$0xff]  ;;  %v396_v47 = vld [vmem:[%s366_s16] sm:$0xff]  ;;  %s593_s16 = scalar_lea.sflag [#allocation5], %s360_s30  ;;  %p1055_p10 = pnand %p1054_p1, %p1422_p8 }
  0x5b   : > { %896 = vmatprep.subr.bf16.mxu1 %v1145_v0  ;;  %v888_v45 = vpack.c.bf16 %v412_v41, %v411_v40  ;;  %v909_v46 = vpack.c.bf16 %v505_v44, %v504_v43  ;;  %v506_v48 = vld [vmem:[#allocation6 + $0x70] sm:$0xff]  ;;  %v507_v49 = vld [vmem:[#allocation6 + $0x78] sm:$0xff]  ;;  %v584_v52 = vld [vmem:[%s383_s20] sm:$0xff]  ;;  %s1059_s20 = scalar_lea.vmem %s1058_s19, 256  ;;  %p1060_p2 = scmp.lt.s32.totalorder %s1355_s11, %s1058_s19 }
  0x5c   : > { %874 = vmatpush3.bf16.msra.mxu0 %v873_v14  ;;  %v912_v50 = vpack.c.bf16 %v507_v49, %v506_v48  ;;  %587 = vperm.xlu0 %996, %v584_v52   ;;  %v757_v53 = vld [vmem:[%s1402_s2] ss:$0 sm:$0xff]  ;;  %p1056_p11 = pneg %p1055_p10  ;;  %p1061_p3 = scmp.lt.s32.totalorder %s1059_s20, %s1053_s18 }
  0x5d   : > { %875 = vmatprep.subr.bf16.mxu0 %v1145_v0  ;;  %v756_v58 = vld [vmem:[%s1404_s4] ss:$0 sm:$0xff] }
  0x5e   : > { %898 = vmatpush3.bf16.msra.mxu1 %v897_v24  ;;  %p1062_p5 = por %p1061_p3, %p1060_p2 }
  0x5f   : > { %899 = vmatprep.subr.bf16.mxu1 %v1145_v0 }
  0x60   : > { %877 = vmatpush3.bf16.msra.mxu0 %v876_v21  ;;  %p1063_p6 = pnand %p1062_p5, %p1056_p11 }
  0x61   : > { %878 = vmatprep.subr.bf16.mxu0 %v1145_v0 }
  0x62   : > { %901 = vmatpush3.bf16.msra.mxu1 %v900_v30 }
  0x63   : > { %902 = vmatprep.subr.bf16.mxu1 %v1145_v0 }
  0x64   : > { %880 = vmatpush3.bf16.msra.mxu0 %v879_v27 }
  0x65   : > { %881 = vmatprep.subr.bf16.mxu0 %v1145_v0 }
  0x66   : > { %904 = vmatpush3.bf16.msra.mxu1 %v903_v36 }
  0x67   : > { %905 = vmatprep.subr.bf16.mxu1 %v1145_v0 }
  0x68   : > { %883 = vmatpush3.bf16.msra.mxu0 %v882_v33 }
  0x69   : > { %884 = vmatprep.subr.bf16.mxu0 %v1145_v0 }
  0x6a   : > { %907 = vmatpush3.bf16.msra.mxu1 %v906_v42 }
  0x6b   : > { %908 = vmatprep.subr.bf16.mxu1 %v1145_v0 }
  0x6c   : > { %886 = vmatpush3.bf16.msra.mxu0 %v885_v39 }
  0x6d   : > { %887 = vmatprep.subr.bf16.mxu0 %v1145_v0 }
  0x6e   : > { %910 = vmatpush3.bf16.msra.mxu1 %v909_v46 }
  0x6f   : > { %911 = vmatprep.subr.bf16.mxu1 %v1145_v0 }
  0x70   : > { %889 = vmatpush3.bf16.msra.mxu0 %v888_v45 }
  0x72   : > { %913 = vmatpush3.bf16.msra.mxu1 %v912_v50 }
  0x73   : > { %829 = vmatmul.mubr.f32.vlgmr.msra.gmra.mrb[0].mxu0 %v396_v47 }
  0xdb   : > { %v588_v60 = vpop.permute.xlu0 %587 }
 0x146   : > { %v486_v54 = vpop.f32.mrb[0].mxu0 }
 0x147   : > { %v487_v55 = vadd.f32 %v757_v53, %v486_v54  ;;  %v830_v56 = vpop.f32.mrb[1].mxu0 }
 0x149   : > { %v490_v57 = vmax.f32 %v487_v55, 0.0 }
 0x14b   : > { %864 = vmatmul.mubr.f32.vlgmr.msra.gmra.mrb[0].mxu1 %v490_v57 }
 0x21e   : > { %v574_v59 = vpop.f32.mrb[0].mxu1 }
 0x21f   : > { %v578_v61 = vadd.f32 %v756_v58, %v574_v59  ;;  %v865_v62 = vpop.f32.mrb[1].mxu1 }
 0x221   : > { %v590_v63 = vmul.f32 %v588_v60, %v578_v61 }
 0x223   : > { %591 = vst [vmem:[%s362_s29] sm:$0xff] %v590_v63 }
 0x224   : > { %1066 = shalt.err (!%p1063_p6)
}
 0x225   : > { %s1067_s27 = scalar_lea.hbm %s1353_s17, 128  ;;  %s1071_s8 = scalar_lea.hbm %s1406_s6, 256 }
 0x226   : > { %p1068_p7 = scmp.ne.s32.totalorder %s1353_s17, %s1067_s27  ;;  %p1072_p0 = scmp.lt.u32.totalorder %s1353_s17, %s1406_s6 }
 0x227   : > { %p1073_p4 = scmp.lt.u32.totalorder %s1071_s8, %s1067_s27  ;;  %p1075_p1 = scmp.lt.u32.totalorder %s1067_s27, %s1353_s17 }
 0x228   : > { %p1069_p9 = pnand %p1068_p7, %p1422_p8 }
 0x229   : > { %p1074_p13 = por %p1073_p4, %p1072_p0 }
 0x22a   : > { %p1070_p12 = pneg %p1069_p9 }
 0x22b   : > { %p1076_p10 = por %p1075_p1, %p1074_p13 }
 0x22d   : > { %p1077_p11 = pnand %p1076_p10, %p1070_p12 }
 0x22f   : > { %1080 = shalt.err (!%p1077_p11)
}
 0x230   : > { %922 = dma.vmem_to_hbm [thread:$0]  (%p1422_p8), %s1355_s11, 128, %s1353_s17, %s593_s16  }
 0x231 PF: > { %p939_p2 = scmp.ge.s32.totalorder %s1139_s26, 2  ;;  %s619_s25 = sand.u32 1, %s1119_s21  }
 0x232   : > { %p1423_p3 = scmp.ne.s32.totalorder %s1416_s9, 0  ;;  %s620_s29 = scalar_lea.sflag [#allocation5], %s619_s25 }
 0x234   : > { %p932_p5 = pnand %p939_p2, %p1423_p3 }
 0x236   : > { %1114 = dma.done.wait (!%p932_p5), %s620_s29, 128  }
 0x237   : > { %1116 = vsyncadd (!%p932_p5), %s620_s29, 4294967168  ;;  %s21_s26 = sadd.s32 1, %s1139_s26   ;;  %s1424_s24 = sld [smem:[#allocation12_spill]] }
 0x238   : > { %p18_p6 = scmp.ge.s32.totalorder %s21_s26, 4   ;;  %s1425_s25 = sld [smem:[#allocation13_spill]] }
 0x239   : > { %s1426_s21 = smov %s1123_s22  ;;  %s1427_s22 = smov %s1127_s23 }
 0x23a   : > { %s1428_s23 = smov %s1238_s10  ;;  %20 = sbr.rel (!%p18_p6) target bundleno = 6 (0x6), region = 107 }
 0x241   :  { %625 = vsyncpa [#allocation4], 1 }
 0x242   :  { %627 = vsyncpa [#allocation4 + $0x1], 1 }
 0x243   :  { %628 = vsyncpa [#allocation7], 1 }
 0x244   :  { %629 = vsyncpa [#allocation5], 1 }
 0x245   :  { %631 = vsyncpa [#allocation5 + $0x1], 1 }

</bundles_post_ra>
